<compile_context>
chip_gen: v7x
topology: tpu7x:2x2x1
jax: 0.10.0
libtpu: 0.0.40
codegen_flags: <defaults>
</compile_context>

<pallas_src>
import jax
import jax.numpy as jnp
from jax.experimental import pallas as pl
from jax.experimental.pallas import tpu as pltpu

# ---- problem sizes (small, consistent with an e2cnn R2Conv forward) --------
N, C_IN, H, W = 2, 4, 16, 16       # batch, in channels, spatial
C_OUT = 8                          # out channels
K = 3                              # kernel size
PAD = 1                            # "same" padding, stride 1
N_BASIS = 5                        # number of steerable basis filters
HW = H * W                         # 256  -> lane dimension of the matmuls

assert (W & (W - 1)) == 0, "W must be a power of two (in-kernel w = m & (W-1))"
assert HW % 128 == 0, "H*W must be lane-dense (multiple of 128)"
assert C_OUT % 8 == 0, "C_OUT must be sublane-aligned for unmasked row stores"


def ssconv_kernel(x_ref, w_ref, b_ref, o_ref):
    """Fused 3x3 conv as 9 shifted, masked, full-lane matmuls.

    x_ref: (N, C_IN, H*W)        input, spatial flattened onto lanes
    w_ref: (K*K, C_OUT, C_IN)    per-tap weight matrices
    b_ref: (C_OUT, 1)            bias column (lane broadcast)
    o_ref: (N*C_OUT, H*W)        lane-dense output (reshapes to NCHW for free)
    """
    # Lane coordinate m = h*W + w of every output position (built once).
    lane = jax.lax.broadcasted_iota(jnp.int32, (C_IN, HW), 1)
    lane_w = jnp.bitwise_and(lane, W - 1)          # w = m % W  (W power of two)

    # Zero-padding border mask per tap (independent of batch / channel data).
    def tap_mask(dh, dw):
        conds = []
        if dh < 0:
            conds.append(lane >= (-dh) * W)        # h >= -dh
        if dh > 0:
            conds.append(lane < (H - dh) * W)      # h <  H - dh
        if dw < 0:
            conds.append(lane_w >= -dw)            # w >= -dw
        if dw > 0:
            conds.append(lane_w < W - dw)          # w <  W - dw
        if not conds:
            return None
        m = conds[0]
        for extra in conds[1:]:
            m = m & extra
        return m

    taps = []
    for kh in range(K):
        for kw in range(K):
            dh, dw = kh - PAD, kw - PAD
            taps.append((kh * K + kw, dh * W + dw, tap_mask(dh, dw)))

    bias = b_ref[...]                              # (C_OUT, 1)
    for n in range(N):                             # N = 2, statically unrolled
        xn = x_ref[n]                              # (C_IN, HW)
        acc = jnp.zeros((C_OUT, HW), jnp.float32)
        for p, off, mask in taps:
            # shifted[c, m] == x[n, c, h+dh, w+dw] for in-bounds positions.
            shifted = xn if off == 0 else jnp.roll(xn, -off, axis=1)
            z = shifted if mask is None else jnp.where(mask, shifted, 0.0)
            acc = acc + jnp.dot(w_ref[p], z, preferred_element_type=jnp.float32)
        # Rows [n*C_OUT, (n+1)*C_OUT): 8-aligned sublane offset, 256 full lanes.
        o_ref[n * C_OUT:(n + 1) * C_OUT, :] = (acc + bias).astype(o_ref.dtype)


@jax.jit
def ssconv_forward(x_nchw, w_taps, b_col):
    """Equivalent of SSConvExported.forward: conv2d, stride 1, pad 1 (NCHW)."""
    x3 = x_nchw.reshape(N, C_IN, HW)               # metadata-only reshape
    out2d = pl.pallas_call(
        ssconv_kernel,
        out_shape=jax.ShapeDtypeStruct((N * C_OUT, HW), jnp.float32),
        in_specs=[pl.BlockSpec(memory_space=pltpu.MemorySpace.VMEM),
                  pl.BlockSpec(memory_space=pltpu.MemorySpace.VMEM),
                  pl.BlockSpec(memory_space=pltpu.MemorySpace.VMEM)],
        out_specs=pl.BlockSpec(memory_space=pltpu.MemorySpace.VMEM),
    )(x3, w_taps, b_col)
    return out2d.reshape(N, C_OUT, H, W)           # metadata-only reshape


def build_params():
    """Deterministic synthetic R2Conv parameters + one-time kernel repack."""
    key = jax.random.PRNGKey(0)
    k_coef, k_basis, k_bias = jax.random.split(key, 3)
    # basis-expansion coefficients: (C_out, C_in, n_basis)
    coeffs = jax.random.normal(k_coef, (C_OUT, C_IN, N_BASIS), jnp.float32) * 0.1
    # synthetic steerable basis filters: (n_basis, K, K)
    basis = jax.random.normal(k_basis, (N_BASIS, K, K), jnp.float32)
    # expanded conv weight (OIHW) and bias — done ONCE at param build time
    weight = jnp.einsum('oib,bkl->oikl', coeffs, basis)
    bias = jax.random.normal(k_bias, (C_OUT,), jnp.float32) * 0.1
    # kernel-friendly layouts, hoisted out of the per-call forward:
    #   w_taps[kh*K+kw, o, c] == weight[o, c, kh, kw]
    w_taps = jnp.transpose(weight, (2, 3, 0, 1)).reshape(K * K, C_OUT, C_IN)
    b_col = bias.reshape(C_OUT, 1)
    return weight, bias, w_taps, b_col


if __name__ == "__main__":
    key = jax.random.PRNGKey(0)
    x = jax.random.normal(key, (N, C_IN, H, W), jnp.float32)
    weight, bias, w_taps, b_col = build_params()

    out = ssconv_forward(x, w_taps, b_col)
    out = jax.block_until_ready(out)

    # sanity check against XLA's conv (same semantics as the torch R2Conv)
    ref = jax.lax.conv_general_dilated(
        x, weight, window_strides=(1, 1), padding=((PAD, PAD), (PAD, PAD)),
        dimension_numbers=('NCHW', 'OIHW', 'NCHW'),
    ) + bias[None, :, None, None]
    assert out.shape == (N, C_OUT, H, W)
    assert jnp.allclose(out, ref, atol=1e-4, rtol=1e-4)

    print("KERNEL_OK")
</pallas_src>

<mosaic_0001>
module attributes {stable_mosaic.version = 11 : i64} {
  func.func @ssconv_kernel(%arg0: memref<2x4x256xf32, #tpu.memory_space<vmem>>, %arg1: memref<9x8x4xf32, #tpu.memory_space<vmem>>, %arg2: memref<8x1xf32, #tpu.memory_space<vmem>>, %arg3: memref<16x256xf32, #tpu.memory_space<vmem>>) attributes {dimension_semantics = [], scalar_prefetch = 0 : i64, scratch_operands = 0 : i64, tpu.core_type = #tpu.core_type<tc>} {
    %0 = tpu.iota {dimensions = array<i32: 1>} : vector<4x256xi32>
    %c15_i32 = arith.constant 15 : i32
    %1 = vector.broadcast %c15_i32 : i32 to vector<4x256xi32>
    %2 = arith.andi %0, %1 : vector<4x256xi32>
    %c16_i32 = arith.constant 16 : i32
    %3 = vector.broadcast %c16_i32 : i32 to vector<4x256xi32>
    %4 = arith.cmpi sge, %0, %3 : vector<4x256xi32>
    %c1_i32 = arith.constant 1 : i32
    %5 = vector.broadcast %c1_i32 : i32 to vector<4x256xi32>
    %6 = arith.cmpi sge, %2, %5 : vector<4x256xi32>
    %7 = arith.andi %4, %6 : vector<4x256xi1>
    %c16_i32_0 = arith.constant 16 : i32
    %8 = vector.broadcast %c16_i32_0 : i32 to vector<4x256xi32>
    %9 = arith.cmpi sge, %0, %8 : vector<4x256xi32>
    %c16_i32_1 = arith.constant 16 : i32
    %10 = vector.broadcast %c16_i32_1 : i32 to vector<4x256xi32>
    %11 = arith.cmpi sge, %0, %10 : vector<4x256xi32>
    %c15_i32_2 = arith.constant 15 : i32
    %12 = vector.broadcast %c15_i32_2 : i32 to vector<4x256xi32>
    %13 = arith.cmpi slt, %2, %12 : vector<4x256xi32>
    %14 = arith.andi %11, %13 : vector<4x256xi1>
    %c1_i32_3 = arith.constant 1 : i32
    %15 = vector.broadcast %c1_i32_3 : i32 to vector<4x256xi32>
    %16 = arith.cmpi sge, %2, %15 : vector<4x256xi32>
    %c15_i32_4 = arith.constant 15 : i32
    %17 = vector.broadcast %c15_i32_4 : i32 to vector<4x256xi32>
    %18 = arith.cmpi slt, %2, %17 : vector<4x256xi32>
    %c240_i32 = arith.constant 240 : i32
    %19 = vector.broadcast %c240_i32 : i32 to vector<4x256xi32>
    %20 = arith.cmpi slt, %0, %19 : vector<4x256xi32>
    %c1_i32_5 = arith.constant 1 : i32
    %21 = vector.broadcast %c1_i32_5 : i32 to vector<4x256xi32>
    %22 = arith.cmpi sge, %2, %21 : vector<4x256xi32>
    %23 = arith.andi %20, %22 : vector<4x256xi1>
    %c240_i32_6 = arith.constant 240 : i32
    %24 = vector.broadcast %c240_i32_6 : i32 to vector<4x256xi32>
    %25 = arith.cmpi slt, %0, %24 : vector<4x256xi32>
    %c240_i32_7 = arith.constant 240 : i32
    %26 = vector.broadcast %c240_i32_7 : i32 to vector<4x256xi32>
    %27 = arith.cmpi slt, %0, %26 : vector<4x256xi32>
    %c15_i32_8 = arith.constant 15 : i32
    %28 = vector.broadcast %c15_i32_8 : i32 to vector<4x256xi32>
    %29 = arith.cmpi slt, %2, %28 : vector<4x256xi32>
    %30 = arith.andi %27, %29 : vector<4x256xi1>
    %c0 = arith.constant 0 : index
    %c0_9 = arith.constant 0 : index
    %31 = vector.load %arg2[%c0, %c0_9] : memref<8x1xf32, #tpu.memory_space<vmem>>, vector<8x1xf32>
    %c0_10 = arith.constant 0 : index
    %c0_11 = arith.constant 0 : index
    %c0_12 = arith.constant 0 : index
    %32 = vector.load %arg0[%c0_10, %c0_11, %c0_12] : memref<2x4x256xf32, #tpu.memory_space<vmem>>, vector<1x4x256xf32>
    %33 = vector.shape_cast %32 : vector<1x4x256xf32> to vector<4x256xf32>
    %cst = arith.constant 0.000000e+00 : f32
    %34 = vector.broadcast %cst : f32 to vector<8x256xf32>
    %35 = vector.extract_strided_slice %33 {offsets = [0, 239], sizes = [4, 17], strides = [1, 1]} : vector<4x256xf32> to vector<4x17xf32>
    %36 = vector.extract_strided_slice %33 {offsets = [0, 0], sizes = [4, 239], strides = [1, 1]} : vector<4x256xf32> to vector<4x239xf32>
    %37 = tpu.concatenate %35, %36 in 1 : vector<4x17xf32>, vector<4x239xf32> -> vector<4x256xf32>
    %cst_13 = arith.constant 0.000000e+00 : f32
    %38 = vector.broadcast %cst_13 : f32 to vector<4x256xf32>
    %39 = arith.select %7, %37, %38 : vector<4x256xi1>, vector<4x256xf32>
    %c0_14 = arith.constant 0 : index
    %c0_15 = arith.constant 0 : index
    %c0_16 = arith.constant 0 : index
    %40 = vector.load %arg1[%c0_14, %c0_15, %c0_16] : memref<9x8x4xf32, #tpu.memory_space<vmem>>, vector<1x8x4xf32>
    %41 = vector.shape_cast %40 : vector<1x8x4xf32> to vector<8x4xf32>
    %cst_17 = arith.constant dense<0.000000e+00> : vector<8x256xf32>
    %42 = tpu.matmul %41, %39, %cst_17 {dimension_numbers = #tpu.dot_dimension_numbers<[1], [0], [0], [1], [0, 0, 1, 1], [], []>} : vector<8x4xf32>, vector<4x256xf32>, vector<8x256xf32> -> vector<8x256xf32>
    %43 = arith.addf %34, %42 : vector<8x256xf32>
    %44 = vector.extract_strided_slice %33 {offsets = [0, 240], sizes = [4, 16], strides = [1, 1]} : vector<4x256xf32> to vector<4x16xf32>
    %45 = vector.extract_strided_slice %33 {offsets = [0, 0], sizes = [4, 240], strides = [1, 1]} : vector<4x256xf32> to vector<4x240xf32>
    %46 = tpu.concatenate %44, %45 in 1 : vector<4x16xf32>, vector<4x240xf32> -> vector<4x256xf32>
    %cst_18 = arith.constant 0.000000e+00 : f32
    %47 = vector.broadcast %cst_18 : f32 to vector<4x256xf32>
    %48 = arith.select %9, %46, %47 : vector<4x256xi1>, vector<4x256xf32>
    %c1 = arith.constant 1 : index
    %c0_19 = arith.constant 0 : index
    %c0_20 = arith.constant 0 : index
    %49 = vector.load %arg1[%c1, %c0_19, %c0_20] : memref<9x8x4xf32, #tpu.memory_space<vmem>>, vector<1x8x4xf32>
    %50 = vector.shape_cast %49 : vector<1x8x4xf32> to vector<8x4xf32>
    %cst_21 = arith.constant dense<0.000000e+00> : vector<8x256xf32>
    %51 = tpu.matmul %50, %48, %cst_21 {dimension_numbers = #tpu.dot_dimension_numbers<[1], [0], [0], [1], [0, 0, 1, 1], [], []>} : vector<8x4xf32>, vector<4x256xf32>, vector<8x256xf32> -> vector<8x256xf32>
    %52 = arith.addf %43, %51 : vector<8x256xf32>
    %53 = vector.extract_strided_slice %33 {offsets = [0, 241], sizes = [4, 15], strides = [1, 1]} : vector<4x256xf32> to vector<4x15xf32>
    %54 = vector.extract_strided_slice %33 {offsets = [0, 0], sizes = [4, 241], strides = [1, 1]} : vector<4x256xf32> to vector<4x241xf32>
    %55 = tpu.concatenate %53, %54 in 1 : vector<4x15xf32>, vector<4x241xf32> -> vector<4x256xf32>
    %cst_22 = arith.constant 0.000000e+00 : f32
    %56 = vector.broadcast %cst_22 : f32 to vector<4x256xf32>
    %57 = arith.select %14, %55, %56 : vector<4x256xi1>, vector<4x256xf32>
    %c2 = arith.constant 2 : index
    %c0_23 = arith.constant 0 : index
    %c0_24 = arith.constant 0 : index
    %58 = vector.load %arg1[%c2, %c0_23, %c0_24] : memref<9x8x4xf32, #tpu.memory_space<vmem>>, vector<1x8x4xf32>
    %59 = vector.shape_cast %58 : vector<1x8x4xf32> to vector<8x4xf32>
    %cst_25 = arith.constant dense<0.000000e+00> : vector<8x256xf32>
    %60 = tpu.matmul %59, %57, %cst_25 {dimension_numbers = #tpu.dot_dimension_numbers<[1], [0], [0], [1], [0, 0, 1, 1], [], []>} : vector<8x4xf32>, vector<4x256xf32>, vector<8x256xf32> -> vector<8x256xf32>
    %61 = arith.addf %52, %60 : vector<8x256xf32>
    %62 = vector.extract_strided_slice %33 {offsets = [0, 255], sizes = [4, 1], strides = [1, 1]} : vector<4x256xf32> to vector<4x1xf32>
    %63 = vector.extract_strided_slice %33 {offsets = [0, 0], sizes = [4, 255], strides = [1, 1]} : vector<4x256xf32> to vector<4x255xf32>
    %64 = tpu.concatenate %62, %63 in 1 : vector<4x1xf32>, vector<4x255xf32> -> vector<4x256xf32>
    %cst_26 = arith.constant 0.000000e+00 : f32
    %65 = vector.broadcast %cst_26 : f32 to vector<4x256xf32>
    %66 = arith.select %16, %64, %65 : vector<4x256xi1>, vector<4x256xf32>
    %c3 = arith.constant 3 : index
    %c0_27 = arith.constant 0 : index
    %c0_28 = arith.constant 0 : index
    %67 = vector.load %arg1[%c3, %c0_27, %c0_28] : memref<9x8x4xf32, #tpu.memory_space<vmem>>, vector<1x8x4xf32>
    %68 = vector.shape_cast %67 : vector<1x8x4xf32> to vector<8x4xf32>
    %cst_29 = arith.constant dense<0.000000e+00> : vector<8x256xf32>
    %69 = tpu.matmul %68, %66, %cst_29 {dimension_numbers = #tpu.dot_dimension_numbers<[1], [0], [0], [1], [0, 0, 1, 1], [], []>} : vector<8x4xf32>, vector<4x256xf32>, vector<8x256xf32> -> vector<8x256xf32>
    %70 = arith.addf %61, %69 : vector<8x256xf32>
    %c4 = arith.constant 4 : index
    %c0_30 = arith.constant 0 : index
    %c0_31 = arith.constant 0 : index
    %71 = vector.load %arg1[%c4, %c0_30, %c0_31] : memref<9x8x4xf32, #tpu.memory_space<vmem>>, vector<1x8x4xf32>
    %72 = vector.shape_cast %71 : vector<1x8x4xf32> to vector<8x4xf32>
    %cst_32 = arith.constant dense<0.000000e+00> : vector<8x256xf32>
    %73 = tpu.matmul %72, %33, %cst_32 {dimension_numbers = #tpu.dot_dimension_numbers<[1], [0], [0], [1], [0, 0, 1, 1], [], []>} : vector<8x4xf32>, vector<4x256xf32>, vector<8x256xf32> -> vector<8x256xf32>
    %74 = arith.addf %70, %73 : vector<8x256xf32>
    %75 = vector.extract_strided_slice %33 {offsets = [0, 1], sizes = [4, 255], strides = [1, 1]} : vector<4x256xf32> to vector<4x255xf32>
    %76 = vector.extract_strided_slice %33 {offsets = [0, 0], sizes = [4, 1], strides = [1, 1]} : vector<4x256xf32> to vector<4x1xf32>
    %77 = tpu.concatenate %75, %76 in 1 : vector<4x255xf32>, vector<4x1xf32> -> vector<4x256xf32>
    %cst_33 = arith.constant 0.000000e+00 : f32
    %78 = vector.broadcast %cst_33 : f32 to vector<4x256xf32>
    %79 = arith.select %18, %77, %78 : vector<4x256xi1>, vector<4x256xf32>
    %c5 = arith.constant 5 : index
    %c0_34 = arith.constant 0 : index
    %c0_35 = arith.constant 0 : index
    %80 = vector.load %arg1[%c5, %c0_34, %c0_35] : memref<9x8x4xf32, #tpu.memory_space<vmem>>, vector<1x8x4xf32>
    %81 = vector.shape_cast %80 : vector<1x8x4xf32> to vector<8x4xf32>
    %cst_36 = arith.constant dense<0.000000e+00> : vector<8x256xf32>
    %82 = tpu.matmul %81, %79, %cst_36 {dimension_numbers = #tpu.dot_dimension_numbers<[1], [0], [0], [1], [0, 0, 1, 1], [], []>} : vector<8x4xf32>, vector<4x256xf32>, vector<8x256xf32> -> vector<8x256xf32>
    %83 = arith.addf %74, %82 : vector<8x256xf32>
    %84 = vector.extract_strided_slice %33 {offsets = [0, 15], sizes = [4, 241], strides = [1, 1]} : vector<4x256xf32> to vector<4x241xf32>
    %85 = vector.extract_strided_slice %33 {offsets = [0, 0], sizes = [4, 15], strides = [1, 1]} : vector<4x256xf32> to vector<4x15xf32>
    %86 = tpu.concatenate %84, %85 in 1 : vector<4x241xf32>, vector<4x15xf32> -> vector<4x256xf32>
    %cst_37 = arith.constant 0.000000e+00 : f32
    %87 = vector.broadcast %cst_37 : f32 to vector<4x256xf32>
    %88 = arith.select %23, %86, %87 : vector<4x256xi1>, vector<4x256xf32>
    %c6 = arith.constant 6 : index
    %c0_38 = arith.constant 0 : index
    %c0_39 = arith.constant 0 : index
    %89 = vector.load %arg1[%c6, %c0_38, %c0_39] : memref<9x8x4xf32, #tpu.memory_space<vmem>>, vector<1x8x4xf32>
    %90 = vector.shape_cast %89 : vector<1x8x4xf32> to vector<8x4xf32>
    %cst_40 = arith.constant dense<0.000000e+00> : vector<8x256xf32>
    %91 = tpu.matmul %90, %88, %cst_40 {dimension_numbers = #tpu.dot_dimension_numbers<[1], [0], [0], [1], [0, 0, 1, 1], [], []>} : vector<8x4xf32>, vector<4x256xf32>, vector<8x256xf32> -> vector<8x256xf32>
    %92 = arith.addf %83, %91 : vector<8x256xf32>
    %93 = vector.extract_strided_slice %33 {offsets = [0, 16], sizes = [4, 240], strides = [1, 1]} : vector<4x256xf32> to vector<4x240xf32>
    %94 = vector.extract_strided_slice %33 {offsets = [0, 0], sizes = [4, 16], strides = [1, 1]} : vector<4x256xf32> to vector<4x16xf32>
    %95 = tpu.concatenate %93, %94 in 1 : vector<4x240xf32>, vector<4x16xf32> -> vector<4x256xf32>
    %cst_41 = arith.constant 0.000000e+00 : f32
    %96 = vector.broadcast %cst_41 : f32 to vector<4x256xf32>
    %97 = arith.select %25, %95, %96 : vector<4x256xi1>, vector<4x256xf32>
    %c7 = arith.constant 7 : index
    %c0_42 = arith.constant 0 : index
    %c0_43 = arith.constant 0 : index
    %98 = vector.load %arg1[%c7, %c0_42, %c0_43] : memref<9x8x4xf32, #tpu.memory_space<vmem>>, vector<1x8x4xf32>
    %99 = vector.shape_cast %98 : vector<1x8x4xf32> to vector<8x4xf32>
    %cst_44 = arith.constant dense<0.000000e+00> : vector<8x256xf32>
    %100 = tpu.matmul %99, %97, %cst_44 {dimension_numbers = #tpu.dot_dimension_numbers<[1], [0], [0], [1], [0, 0, 1, 1], [], []>} : vector<8x4xf32>, vector<4x256xf32>, vector<8x256xf32> -> vector<8x256xf32>
    %101 = arith.addf %92, %100 : vector<8x256xf32>
    %102 = vector.extract_strided_slice %33 {offsets = [0, 17], sizes = [4, 239], strides = [1, 1]} : vector<4x256xf32> to vector<4x239xf32>
    %103 = vector.extract_strided_slice %33 {offsets = [0, 0], sizes = [4, 17], strides = [1, 1]} : vector<4x256xf32> to vector<4x17xf32>
    %104 = tpu.concatenate %102, %103 in 1 : vector<4x239xf32>, vector<4x17xf32> -> vector<4x256xf32>
    %cst_45 = arith.constant 0.000000e+00 : f32
    %105 = vector.broadcast %cst_45 : f32 to vector<4x256xf32>
    %106 = arith.select %30, %104, %105 : vector<4x256xi1>, vector<4x256xf32>
    %c8 = arith.constant 8 : index
    %c0_46 = arith.constant 0 : index
    %c0_47 = arith.constant 0 : index
    %107 = vector.load %arg1[%c8, %c0_46, %c0_47] : memref<9x8x4xf32, #tpu.memory_space<vmem>>, vector<1x8x4xf32>
    %108 = vector.shape_cast %107 : vector<1x8x4xf32> to vector<8x4xf32>
    %cst_48 = arith.constant dense<0.000000e+00> : vector<8x256xf32>
    %109 = tpu.matmul %108, %106, %cst_48 {dimension_numbers = #tpu.dot_dimension_numbers<[1], [0], [0], [1], [0, 0, 1, 1], [], []>} : vector<8x4xf32>, vector<4x256xf32>, vector<8x256xf32> -> vector<8x256xf32>
    %110 = arith.addf %101, %109 : vector<8x256xf32>
    %111 = vector.broadcast %31 : vector<8x1xf32> to vector<8x256xf32>
    %112 = arith.addf %110, %111 : vector<8x256xf32>
    %c0_49 = arith.constant 0 : index
    %c0_50 = arith.constant 0 : index
    %113 = vector.load %arg3[%c0_49, %c0_50] : memref<16x256xf32, #tpu.memory_space<vmem>>, vector<8x256xf32>
    tpu.vector_store %arg3[%c0_49, %c0_50], %112 {strides = array<i32>} : memref<16x256xf32, #tpu.memory_space<vmem>>, vector<8x256xf32>,
    %c1_51 = arith.constant 1 : index
    %c0_52 = arith.constant 0 : index
    %c0_53 = arith.constant 0 : index
    %114 = vector.load %arg0[%c1_51, %c0_52, %c0_53] : memref<2x4x256xf32, #tpu.memory_space<vmem>>, vector<1x4x256xf32>
    %115 = vector.shape_cast %114 : vector<1x4x256xf32> to vector<4x256xf32>
    %cst_54 = arith.constant 0.000000e+00 : f32
    %116 = vector.broadcast %cst_54 : f32 to vector<8x256xf32>
    %117 = vector.extract_strided_slice %115 {offsets = [0, 239], sizes = [4, 17], strides = [1, 1]} : vector<4x256xf32> to vector<4x17xf32>
    %118 = vector.extract_strided_slice %115 {offsets = [0, 0], sizes = [4, 239], strides = [1, 1]} : vector<4x256xf32> to vector<4x239xf32>
    %119 = tpu.concatenate %117, %118 in 1 : vector<4x17xf32>, vector<4x239xf32> -> vector<4x256xf32>
    %cst_55 = arith.constant 0.000000e+00 : f32
    %120 = vector.broadcast %cst_55 : f32 to vector<4x256xf32>
    %121 = arith.select %7, %119, %120 : vector<4x256xi1>, vector<4x256xf32>
    %c0_56 = arith.constant 0 : index
    %c0_57 = arith.constant 0 : index
    %c0_58 = arith.constant 0 : index
    %122 = vector.load %arg1[%c0_56, %c0_57, %c0_58] : memref<9x8x4xf32, #tpu.memory_space<vmem>>, vector<1x8x4xf32>
    %123 = vector.shape_cast %122 : vector<1x8x4xf32> to vector<8x4xf32>
    %cst_59 = arith.constant dense<0.000000e+00> : vector<8x256xf32>
    %124 = tpu.matmul %123, %121, %cst_59 {dimension_numbers = #tpu.dot_dimension_numbers<[1], [0], [0], [1], [0, 0, 1, 1], [], []>} : vector<8x4xf32>, vector<4x256xf32>, vector<8x256xf32> -> vector<8x256xf32>
    %125 = arith.addf %116, %124 : vector<8x256xf32>
    %126 = vector.extract_strided_slice %115 {offsets = [0, 240], sizes = [4, 16], strides = [1, 1]} : vector<4x256xf32> to vector<4x16xf32>
    %127 = vector.extract_strided_slice %115 {offsets = [0, 0], sizes = [4, 240], strides = [1, 1]} : vector<4x256xf32> to vector<4x240xf32>
    %128 = tpu.concatenate %126, %127 in 1 : vector<4x16xf32>, vector<4x240xf32> -> vector<4x256xf32>
    %cst_60 = arith.constant 0.000000e+00 : f32
    %129 = vector.broadcast %cst_60 : f32 to vector<4x256xf32>
    %130 = arith.select %9, %128, %129 : vector<4x256xi1>, vector<4x256xf32>
    %c1_61 = arith.constant 1 : index
    %c0_62 = arith.constant 0 : index
    %c0_63 = arith.constant 0 : index
    %131 = vector.load %arg1[%c1_61, %c0_62, %c0_63] : memref<9x8x4xf32, #tpu.memory_space<vmem>>, vector<1x8x4xf32>
    %132 = vector.shape_cast %131 : vector<1x8x4xf32> to vector<8x4xf32>
    %cst_64 = arith.constant dense<0.000000e+00> : vector<8x256xf32>
    %133 = tpu.matmul %132, %130, %cst_64 {dimension_numbers = #tpu.dot_dimension_numbers<[1], [0], [0], [1], [0, 0, 1, 1], [], []>} : vector<8x4xf32>, vector<4x256xf32>, vector<8x256xf32> -> vector<8x256xf32>
    %134 = arith.addf %125, %133 : vector<8x256xf32>
    %135 = vector.extract_strided_slice %115 {offsets = [0, 241], sizes = [4, 15], strides = [1, 1]} : vector<4x256xf32> to vector<4x15xf32>
    %136 = vector.extract_strided_slice %115 {offsets = [0, 0], sizes = [4, 241], strides = [1, 1]} : vector<4x256xf32> to vector<4x241xf32>
    %137 = tpu.concatenate %135, %136 in 1 : vector<4x15xf32>, vector<4x241xf32> -> vector<4x256xf32>
    %cst_65 = arith.constant 0.000000e+00 : f32
    %138 = vector.broadcast %cst_65 : f32 to vector<4x256xf32>
    %139 = arith.select %14, %137, %138 : vector<4x256xi1>, vector<4x256xf32>
    %c2_66 = arith.constant 2 : index
    %c0_67 = arith.constant 0 : index
    %c0_68 = arith.constant 0 : index
    %140 = vector.load %arg1[%c2_66, %c0_67, %c0_68] : memref<9x8x4xf32, #tpu.memory_space<vmem>>, vector<1x8x4xf32>
    %141 = vector.shape_cast %140 : vector<1x8x4xf32> to vector<8x4xf32>
    %cst_69 = arith.constant dense<0.000000e+00> : vector<8x256xf32>
    %142 = tpu.matmul %141, %139, %cst_69 {dimension_numbers = #tpu.dot_dimension_numbers<[1], [0], [0], [1], [0, 0, 1, 1], [], []>} : vector<8x4xf32>, vector<4x256xf32>, vector<8x256xf32> -> vector<8x256xf32>
    %143 = arith.addf %134, %142 : vector<8x256xf32>
    %144 = vector.extract_strided_slice %115 {offsets = [0, 255], sizes = [4, 1], strides = [1, 1]} : vector<4x256xf32> to vector<4x1xf32>
    %145 = vector.extract_strided_slice %115 {offsets = [0, 0], sizes = [4, 255], strides = [1, 1]} : vector<4x256xf32> to vector<4x255xf32>
    %146 = tpu.concatenate %144, %145 in 1 : vector<4x1xf32>, vector<4x255xf32> -> vector<4x256xf32>
    %cst_70 = arith.constant 0.000000e+00 : f32
    %147 = vector.broadcast %cst_70 : f32 to vector<4x256xf32>
    %148 = arith.select %16, %146, %147 : vector<4x256xi1>, vector<4x256xf32>
    %c3_71 = arith.constant 3 : index
    %c0_72 = arith.constant 0 : index
    %c0_73 = arith.constant 0 : index
    %149 = vector.load %arg1[%c3_71, %c0_72, %c0_73] : memref<9x8x4xf32, #tpu.memory_space<vmem>>, vector<1x8x4xf32>
    %150 = vector.shape_cast %149 : vector<1x8x4xf32> to vector<8x4xf32>
    %cst_74 = arith.constant dense<0.000000e+00> : vector<8x256xf32>
    %151 = tpu.matmul %150, %148, %cst_74 {dimension_numbers = #tpu.dot_dimension_numbers<[1], [0], [0], [1], [0, 0, 1, 1], [], []>} : vector<8x4xf32>, vector<4x256xf32>, vector<8x256xf32> -> vector<8x256xf32>
    %152 = arith.addf %143, %151 : vector<8x256xf32>
    %c4_75 = arith.constant 4 : index
    %c0_76 = arith.constant 0 : index
    %c0_77 = arith.constant 0 : index
    %153 = vector.load %arg1[%c4_75, %c0_76, %c0_77] : memref<9x8x4xf32, #tpu.memory_space<vmem>>, vector<1x8x4xf32>
    %154 = vector.shape_cast %153 : vector<1x8x4xf32> to vector<8x4xf32>
    %cst_78 = arith.constant dense<0.000000e+00> : vector<8x256xf32>
    %155 = tpu.matmul %154, %115, %cst_78 {dimension_numbers = #tpu.dot_dimension_numbers<[1], [0], [0], [1], [0, 0, 1, 1], [], []>} : vector<8x4xf32>, vector<4x256xf32>, vector<8x256xf32> -> vector<8x256xf32>
    %156 = arith.addf %152, %155 : vector<8x256xf32>
    %157 = vector.extract_strided_slice %115 {offsets = [0, 1], sizes = [4, 255], strides = [1, 1]} : vector<4x256xf32> to vector<4x255xf32>
    %158 = vector.extract_strided_slice %115 {offsets = [0, 0], sizes = [4, 1], strides = [1, 1]} : vector<4x256xf32> to vector<4x1xf32>
    %159 = tpu.concatenate %157, %158 in 1 : vector<4x255xf32>, vector<4x1xf32> -> vector<4x256xf32>
    %cst_79 = arith.constant 0.000000e+00 : f32
    %160 = vector.broadcast %cst_79 : f32 to vector<4x256xf32>
    %161 = arith.select %18, %159, %160 : vector<4x256xi1>, vector<4x256xf32>
    %c5_80 = arith.constant 5 : index
    %c0_81 = arith.constant 0 : index
    %c0_82 = arith.constant 0 : index
    %162 = vector.load %arg1[%c5_80, %c0_81, %c0_82] : memref<9x8x4xf32, #tpu.memory_space<vmem>>, vector<1x8x4xf32>
    %163 = vector.shape_cast %162 : vector<1x8x4xf32> to vector<8x4xf32>
    %cst_83 = arith.constant dense<0.000000e+00> : vector<8x256xf32>
    %164 = tpu.matmul %163, %161, %cst_83 {dimension_numbers = #tpu.dot_dimension_numbers<[1], [0], [0], [1], [0, 0, 1, 1], [], []>} : vector<8x4xf32>, vector<4x256xf32>, vector<8x256xf32> -> vector<8x256xf32>
    %165 = arith.addf %156, %164 : vector<8x256xf32>
    %166 = vector.extract_strided_slice %115 {offsets = [0, 15], sizes = [4, 241], strides = [1, 1]} : vector<4x256xf32> to vector<4x241xf32>
    %167 = vector.extract_strided_slice %115 {offsets = [0, 0], sizes = [4, 15], strides = [1, 1]} : vector<4x256xf32> to vector<4x15xf32>
    %168 = tpu.concatenate %166, %167 in 1 : vector<4x241xf32>, vector<4x15xf32> -> vector<4x256xf32>
    %cst_84 = arith.constant 0.000000e+00 : f32
    %169 = vector.broadcast %cst_84 : f32 to vector<4x256xf32>
    %170 = arith.select %23, %168, %169 : vector<4x256xi1>, vector<4x256xf32>
    %c6_85 = arith.constant 6 : index
    %c0_86 = arith.constant 0 : index
    %c0_87 = arith.constant 0 : index
    %171 = vector.load %arg1[%c6_85, %c0_86, %c0_87] : memref<9x8x4xf32, #tpu.memory_space<vmem>>, vector<1x8x4xf32>
    %172 = vector.shape_cast %171 : vector<1x8x4xf32> to vector<8x4xf32>
    %cst_88 = arith.constant dense<0.000000e+00> : vector<8x256xf32>
    %173 = tpu.matmul %172, %170, %cst_88 {dimension_numbers = #tpu.dot_dimension_numbers<[1], [0], [0], [1], [0, 0, 1, 1], [], []>} : vector<8x4xf32>, vector<4x256xf32>, vector<8x256xf32> -> vector<8x256xf32>
    %174 = arith.addf %165, %173 : vector<8x256xf32>
    %175 = vector.extract_strided_slice %115 {offsets = [0, 16], sizes = [4, 240], strides = [1, 1]} : vector<4x256xf32> to vector<4x240xf32>
    %176 = vector.extract_strided_slice %115 {offsets = [0, 0], sizes = [4, 16], strides = [1, 1]} : vector<4x256xf32> to vector<4x16xf32>
    %177 = tpu.concatenate %175, %176 in 1 : vector<4x240xf32>, vector<4x16xf32> -> vector<4x256xf32>
    %cst_89 = arith.constant 0.000000e+00 : f32
    %178 = vector.broadcast %cst_89 : f32 to vector<4x256xf32>
    %179 = arith.select %25, %177, %178 : vector<4x256xi1>, vector<4x256xf32>
    %c7_90 = arith.constant 7 : index
    %c0_91 = arith.constant 0 : index
    %c0_92 = arith.constant 0 : index
    %180 = vector.load %arg1[%c7_90, %c0_91, %c0_92] : memref<9x8x4xf32, #tpu.memory_space<vmem>>, vector<1x8x4xf32>
    %181 = vector.shape_cast %180 : vector<1x8x4xf32> to vector<8x4xf32>
    %cst_93 = arith.constant dense<0.000000e+00> : vector<8x256xf32>
    %182 = tpu.matmul %181, %179, %cst_93 {dimension_numbers = #tpu.dot_dimension_numbers<[1], [0], [0], [1], [0, 0, 1, 1], [], []>} : vector<8x4xf32>, vector<4x256xf32>, vector<8x256xf32> -> vector<8x256xf32>
    %183 = arith.addf %174, %182 : vector<8x256xf32>
    %184 = vector.extract_strided_slice %115 {offsets = [0, 17], sizes = [4, 239], strides = [1, 1]} : vector<4x256xf32> to vector<4x239xf32>
    %185 = vector.extract_strided_slice %115 {offsets = [0, 0], sizes = [4, 17], strides = [1, 1]} : vector<4x256xf32> to vector<4x17xf32>
    %186 = tpu.concatenate %184, %185 in 1 : vector<4x239xf32>, vector<4x17xf32> -> vector<4x256xf32>
    %cst_94 = arith.constant 0.000000e+00 : f32
    %187 = vector.broadcast %cst_94 : f32 to vector<4x256xf32>
    %188 = arith.select %30, %186, %187 : vector<4x256xi1>, vector<4x256xf32>
    %c8_95 = arith.constant 8 : index
    %c0_96 = arith.constant 0 : index
    %c0_97 = arith.constant 0 : index
    %189 = vector.load %arg1[%c8_95, %c0_96, %c0_97] : memref<9x8x4xf32, #tpu.memory_space<vmem>>, vector<1x8x4xf32>
    %190 = vector.shape_cast %189 : vector<1x8x4xf32> to vector<8x4xf32>
    %cst_98 = arith.constant dense<0.000000e+00> : vector<8x256xf32>
    %191 = tpu.matmul %190, %188, %cst_98 {dimension_numbers = #tpu.dot_dimension_numbers<[1], [0], [0], [1], [0, 0, 1, 1], [], []>} : vector<8x4xf32>, vector<4x256xf32>, vector<8x256xf32> -> vector<8x256xf32>
    %192 = arith.addf %183, %191 : vector<8x256xf32>
    %193 = vector.broadcast %31 : vector<8x1xf32> to vector<8x256xf32>
    %194 = arith.addf %192, %193 : vector<8x256xf32>
    %c8_99 = arith.constant 8 : index
    %c0_100 = arith.constant 0 : index
    %195 = vector.load %arg3[%c8_99, %c0_100] : memref<16x256xf32, #tpu.memory_space<vmem>>, vector<8x256xf32>
    tpu.vector_store %arg3[%c8_99, %c0_100], %194 {strides = array<i32>} : memref<16x256xf32, #tpu.memory_space<vmem>>, vector<8x256xf32>,
    return
  }
}

</mosaic_0001>

<bundles_post_ra>
// kernel: ssconv_forward.1
= control target key start
LH: loop header
LB: loop body
LE: loop exit
PB: predicated region body
PF: predicated region fallthrough
CT: control target
= control target key end

     0   :  { %v1852_v2 = vmov 0.0   ;;  %s1853_s16 = smov 16   ;;  %s1855_s17 = smov 15   ;;  %v1861_v5 = vmov 0   ;;  %v14_v7 = vlaneseq  ;;  %vm57_vm0 = vcmask 130048   ;;  %s2182_s0 = inlined_call_operand.vmem [shape: f32[2,4,256], index: 0, kind: input, shape index: {}]   ;;  %s2183_s2 = inlined_call_operand.vmem [shape: f32[8,1], index: 2, kind: input, shape index: {}]   ;;  %s2184_s1 = inlined_call_operand.vmem [shape: f32[9,8,4], index: 1, kind: input, shape index: {}]   ;;  %s2185_s3 = inlined_call_operand.vmem [shape: f32[16,256], index: 3, kind: output, shape index: {}]  }
   0x1   :  { %v1885_v0 = vld [vmem:[%s2182_s0 + $0x8] sm:$0xff]  ;;  %v1890_v1 = vld [vmem:[%s2182_s0] sm:$0xff]  ;;  %141 = vmatprep.mubr.f32.mxu0 %v1852_v2  ;;  %996 = vmatprep.mubr.f32.mxu1 %v1852_v2  ;;  %s1854_s0 = smov 17   ;;  %s1856_s18 = smov 1   ;;  %vm70_vm1 = vcmask 1043456   ;;  %vm66_vm3 = vcmask 31744  }
   0x2   :  { %914 = vrot.lane.b32.xlu1 %v1885_v0, %s1853_s16  ;;  %55 = vrot.lane.b32.xlu0 %v1890_v1, %s1853_s16  ;;  %v1898_v3 = vcombine.high %v1885_v0, %v1885_v0  ;;  %v1902_v4 = vcombine.high %v1890_v1, %v1890_v1  ;;  %s1857_s19 = smov 127   ;;  %s1858_s20 = smov 113   ;;  %v35_v6 = vld [vmem:[%s2183_s2] sm:$0xff]  ;;  %v15_v8 = vand.u32 127, %v14_v7  ;;  %v1736_v21 = vld [vmem:[%s2184_s1 + $0x8] sm:$0xff]  ;;  %vm44_vm5 = vcmask 138240  }
   0x3   :  { %s1859_s21 = smov 112   ;;  %s1860_s22 = smov 111   ;;  %1849 = vset.pattern.permute.xlu0 %v1861_v5  ;;  %v51_v37 = vld [vmem:[%s2184_s1] sm:$0xff]  ;;  %vm233_vm9 = vcmask 121856   ;;  %v1743_v52 = vld [vmem:[%s2184_s1 + $0x10] sm:$0xff]  ;;  %vm329_vm12 = vcmask 7168  }
   0x4   :  { %v1937_v9 = vadd.s32 128, %v15_v8  ;;  %v17_v12 = vand.u32 15, %v15_v8  ;;  %vm19_vm2 = vcmp.ge.s32.totalorder %v15_v8, 16  ;;  %vm506_vm13 = vcmask 1039360   ;;  %v1759_v41 = vld [vmem:[%s2184_s1 + $0x30] sm:$0xff] }
   0x5   :  { %vm602_vm15 = vcmask 924672  }
   0x6   :  { %911 = vrot.lane.b32.xlu1 %v1898_v3, %s1853_s16  ;;  %52 = vrot.lane.b32.xlu0 %v1902_v4, %s1853_s16  ;;  %v18_v13 = vand.u32 15, %v1937_v9  ;;  %vm1940_vm4 = vcmp.ge.s32.totalorder %v17_v12, 1  ;;  %vm1976_vm8 = vcmp.lt.s32.totalorder %v17_v12, 15  ;;  %vm30_vm14 = vcmp.lt.s32.totalorder %v1937_v9, 240 }
   0x7   :  { %vm1960_vm7 = vmand %vm19_vm2, %vm1940_vm4 }
   0x8   :  { %vm1953_vm6 = vcmp.ge.s32.totalorder %v18_v13, 1  ;;  %vm1990_vm10 = vcmp.lt.s32.totalorder %v18_v13, 15  ;;  %vm1997_vm11 = vmand %vm19_vm2, %vm1976_vm8 }
   0xa   :  { %42 = vrot.lane.b32.xlu1 %v1890_v1, %s1854_s0  ;;  %39 = vrot.lane.b32.xlu0 %v1902_v4, %s1854_s0 }
   0xe   :  { %902 = vrot.lane.b32.xlu1 %v1885_v0, %s1854_s0  ;;  %899 = vrot.lane.b32.xlu0 %v1898_v3, %s1854_s0 }
  0x12   :  { %231 = vrot.lane.b32.xlu1 %v1890_v1, %s1855_s17  ;;  %228 = vrot.lane.b32.xlu0 %v1902_v4, %s1855_s17 }
  0x16   :  { %1086 = vrot.lane.b32.xlu1 %v1885_v0, %s1855_s17  ;;  %1083 = vrot.lane.b32.xlu0 %v1898_v3, %s1855_s17 }
  0x1a   :  { %327 = vrot.lane.b32.xlu1 %v1890_v1, %s1856_s18  ;;  %324 = vrot.lane.b32.xlu0 %v1902_v4, %s1856_s18 }
  0x1e   :  { %1180 = vrot.lane.b32.xlu1 %v1885_v0, %s1856_s18  ;;  %1177 = vrot.lane.b32.xlu0 %v1898_v3, %s1856_s18 }
  0x22   :  { %504 = vrot.lane.b32.xlu1 %v1902_v4, %s1857_s19  ;;  %502 = vrot.lane.b32.xlu0 %v1890_v1, %s1857_s19 }
  0x26   :  { %1354 = vrot.lane.b32.xlu1 %v1898_v3, %s1857_s19  ;;  %1352 = vrot.lane.b32.xlu0 %v1885_v0, %s1857_s19 }
  0x2a   :  { %600 = vrot.lane.b32.xlu1 %v1902_v4, %s1858_s20  ;;  %598 = vrot.lane.b32.xlu0 %v1890_v1, %s1858_s20 }
  0x2e   :  { %1448 = vrot.lane.b32.xlu1 %v1898_v3, %s1858_s20  ;;  %1446 = vrot.lane.b32.xlu0 %v1885_v0, %s1858_s20 }
  0x32   :  { %696 = vrot.lane.b32.xlu1 %v1902_v4, %s1859_s21  ;;  %694 = vrot.lane.b32.xlu0 %v1890_v1, %s1859_s21 }
  0x36   :  { %1542 = vrot.lane.b32.xlu1 %v1898_v3, %s1859_s21  ;;  %1540 = vrot.lane.b32.xlu0 %v1885_v0, %s1859_s21 }
  0x3a   :  { %792 = vrot.lane.b32.xlu1 %v1902_v4, %s1860_s22  ;;  %790 = vrot.lane.b32.xlu0 %v1890_v1, %s1860_s22 }
  0x3e   :  { %1636 = vrot.lane.b32.xlu1 %v1898_v3, %s1860_s22  ;;  %1634 = vrot.lane.b32.xlu0 %v1885_v0, %s1860_s22 }
  0x42   :  { %888 = vperm.xlu0 %1849, %v35_v6   ;;  %v1747_v6 = vld [vmem:[%s2184_s1 + $0x18] sm:$0xff] }
  0x74   :  { %v915_v10 = vpop.permute.xlu1 %914  ;;  %v56_v11 = vpop.permute.xlu0 %55 }
  0x78   :  { %v912_v14 = vpop.permute.xlu1 %911  ;;  %v53_v15 = vpop.permute.xlu0 %52 }
  0x79   :  { %v919_v17 = vsel %vm57_vm0, %v912_v14, %v915_v10  ;;  %v61_v18 = vsel %vm57_vm0, %v53_v15, %v56_v11  ;;  %v58_v19 = vsel %vm57_vm0, %v56_v11, %v53_v15  ;;  %v916_v20 = vsel %vm57_vm0, %v915_v10, %v912_v14  ;;  %vm2082_vm0 = vmand %vm30_vm14, %vm1953_vm6 }
  0x7a   :  { %1737 = vmatprep.subr.msk.mxu0 %vm70_vm1, %v58_v19  ;;  %1773 = vmatprep.subr.msk.mxu1 %vm70_vm1, %v916_v20  ;;  %v62_v22 = vsel %vm19_vm2, %v61_v18, 0.0  ;;  %v920_v23 = vsel %vm19_vm2, %v919_v17, 0.0  ;;  %vm698_vm2 = vcmask 916480  }
  0x7b   :  { %1738 = vmatpush1.msk.msra.mxu0 %vm70_vm1, %v62_v22  ;;  %1774 = vmatpush1.msk.msra.mxu1 %vm70_vm1, %v920_v23 }
  0x7c   :  { %v43_v26 = vpop.permute.xlu1 %42  ;;  %1739 = vmatmul.mubr.msk.f32.vlgmr.msra.gmra.mrb[0].mxu0 %vm66_vm3, %v1736_v21  ;;  %v40_v27 = vpop.permute.xlu0 %39  ;;  %1775 = vmatmul.mubr.msk.f32.vlgmr.msra.gmra.mrb[0].mxu1 %vm66_vm3, %v1736_v21 }
  0x7d   :  { %v45_v28 = vsel %vm44_vm5, %v43_v26, %v40_v27  ;;  %v48_v29 = vsel %vm44_vm5, %v40_v27, %v43_v26  ;;  %221 = vmatprep.mubr.f32.mxu0 %v1852_v2  ;;  %1076 = vmatprep.mubr.f32.mxu1 %v1852_v2 }
  0x7e   :  { %v49_v30 = vsel %vm1960_vm7, %v48_v29, 0.0  ;;  %v50_v31 = vsel %vm1953_vm6, %v45_v28, 0.0  ;;  %v1755_v28 = vld [vmem:[%s2184_s1 + $0x28] sm:$0xff] }
  0x7f   :  { %1740 = vmatprep.subr.msk.mxu0 %vm70_vm1, %v50_v31 }
  0x80   :  { %v903_v32 = vpop.permute.xlu1 %902  ;;  %1741 = vmatpush1.msk.msra.mxu0 %vm70_vm1, %v49_v30  ;;  %v900_v33 = vpop.permute.xlu0 %899 }
  0x81   :  { %v904_v35 = vsel %vm44_vm5, %v903_v32, %v900_v33  ;;  %v907_v36 = vsel %vm44_vm5, %v900_v33, %v903_v32  ;;  %vm2132_vm5 = vmand %vm30_vm14, %vm1990_vm10 }
  0x82   :  { %v908_v38 = vsel %vm1960_vm7, %v907_v36, 0.0  ;;  %v909_v39 = vsel %vm1953_vm6, %v904_v35, 0.0 }
  0x83   :  { %1776 = vmatprep.subr.msk.mxu1 %vm70_vm1, %v909_v39 }
  0x84   :  { %v232_v42 = vpop.permute.xlu1 %231  ;;  %1742 = vmatmul.mubr.msk.f32.vlgmr.msra.gmra.mrb[0].mxu0 %vm66_vm3, %v51_v37  ;;  %1777 = vmatpush1.msk.msra.mxu1 %vm70_vm1, %v908_v38  ;;  %v229_v43 = vpop.permute.xlu0 %228 }
  0x85   :  { %v234_v44 = vsel %vm233_vm9, %v232_v42, %v229_v43  ;;  %v237_v45 = vsel %vm233_vm9, %v229_v43, %v232_v42  ;;  %1778 = vmatmul.mubr.msk.f32.vlgmr.msra.gmra.mrb[0].mxu1 %vm66_vm3, %v51_v37  ;;  %315 = vmatprep.mubr.f32.mxu0 %v1852_v2 }
  0x86   :  { %v238_v46 = vsel %vm1997_vm11, %v237_v45, 0.0  ;;  %v239_v47 = vsel %vm1990_vm10, %v234_v44, 0.0  ;;  %1168 = vmatprep.mubr.f32.mxu1 %v1852_v2 }
  0x87   :  { %1744 = vmatprep.subr.msk.mxu0 %vm70_vm1, %v239_v47 }
  0x88   :  { %v1087_v48 = vpop.permute.xlu1 %1086  ;;  %1745 = vmatpush1.msk.msra.mxu0 %vm70_vm1, %v238_v46  ;;  %v1084_v49 = vpop.permute.xlu0 %1083 }
  0x89   :  { %v1088_v50 = vsel %vm233_vm9, %v1087_v48, %v1084_v49  ;;  %v1091_v51 = vsel %vm233_vm9, %v1084_v49, %v1087_v48 }
  0x8a   :  { %v1092_v53 = vsel %vm1997_vm11, %v1091_v51, 0.0  ;;  %v1093_v54 = vsel %vm1990_vm10, %v1088_v50, 0.0 }
  0x8b   :  { %1780 = vmatprep.subr.msk.mxu1 %vm70_vm1, %v1093_v54 }
  0x8c   :  { %v328_v55 = vpop.permute.xlu1 %327  ;;  %1746 = vmatmul.mubr.msk.f32.vlgmr.msra.gmra.mrb[0].mxu0 %vm66_vm3, %v1743_v52  ;;  %1781 = vmatpush1.msk.msra.mxu1 %vm70_vm1, %v1092_v53  ;;  %v325_v56 = vpop.permute.xlu0 %324 }
  0x8d   :  { %v330_v57 = vsel %vm329_vm12, %v328_v55, %v325_v56  ;;  %v333_v58 = vsel %vm329_vm12, %v325_v56, %v328_v55  ;;  %1782 = vmatmul.mubr.msk.f32.vlgmr.msra.gmra.mrb[0].mxu1 %vm66_vm3, %v1743_v52  ;;  %411 = vmatprep.mubr.f32.mxu0 %v1852_v2  ;;  %v1763_v52 = vld [vmem:[%s2184_s1 + $0x38] sm:$0xff] }
  0x8e   :  { %v334_v59 = vsel %vm1940_vm4, %v333_v58, 0.0  ;;  %v335_v60 = vsel %vm1953_vm6, %v330_v57, 0.0  ;;  %1262 = vmatprep.mubr.f32.mxu1 %v1852_v2  ;;  %v1767_v58 = vld [vmem:[%s2184_s1 + $0x40] sm:$0xff] }
  0x8f   :  { %1748 = vmatprep.subr.msk.mxu0 %vm70_vm1, %v335_v60 }
  0x90   :  { %v1181_v61 = vpop.permute.xlu1 %1180  ;;  %1749 = vmatpush1.msk.msra.mxu0 %vm70_vm1, %v334_v59  ;;  %v1178_v62 = vpop.permute.xlu0 %1177 }
  0x91   :  { %v1182_v63 = vsel %vm329_vm12, %v1181_v61, %v1178_v62  ;;  %v1185_v5 = vsel %vm329_vm12, %v1178_v62, %v1181_v61  ;;  %1752 = vmatprep.subr.msk.mxu0 %vm70_vm1, %v1902_v4 }
  0x92   :  { %v1186_v7 = vsel %vm1940_vm4, %v1185_v5, 0.0  ;;  %v1187_v8 = vsel %vm1953_vm6, %v1182_v63, 0.0 }
  0x93   :  { %1784 = vmatprep.subr.msk.mxu1 %vm70_vm1, %v1187_v8 }
  0x94   :  { %1750 = vmatmul.mubr.msk.f32.vlgmr.msra.gmra.mrb[0].mxu0 %vm66_vm3, %v1747_v6  ;;  %1785 = vmatpush1.msk.msra.mxu1 %vm70_vm1, %v1186_v7  ;;  %v505_v10 = vpop.permute.xlu1 %504  ;;  %v503_v11 = vpop.permute.xlu0 %502 }
  0x95   :  { %1786 = vmatmul.mubr.msk.f32.vlgmr.msra.gmra.mrb[0].mxu1 %vm66_vm3, %v1747_v6  ;;  %v511_v12 = vsel %vm506_vm13, %v505_v10, %v503_v11  ;;  %1753 = vmatpush1.msk.msra.mxu0 %vm70_vm1, %v1890_v1  ;;  %v507_v13 = vsel %vm506_vm13, %v503_v11, %v505_v10  ;;  %v1751_v1 = vld [vmem:[%s2184_s1 + $0x20] sm:$0xff] }
  0x96   :  { %v513_v4 = vsel %vm1990_vm10, %v511_v12, 0.0  ;;  %493 = vmatprep.mubr.f32.mxu0 %v1852_v2  ;;  %1788 = vmatprep.subr.msk.mxu1 %vm70_vm1, %v1898_v3  ;;  %v512_v18 = vsel %vm1976_vm8, %v507_v13, 0.0 }
  0x97   :  { %1789 = vmatpush1.msk.msra.mxu1 %vm70_vm1, %v1885_v0  ;;  %1343 = vmatprep.mubr.f32.mxu1 %v1852_v2 }
  0x98   :  { %v1355_v14 = vpop.permute.xlu1 %1354  ;;  %1756 = vmatprep.subr.msk.mxu0 %vm70_vm1, %v513_v4  ;;  %v1353_v15 = vpop.permute.xlu0 %1352 }
  0x99   :  { %v1356_v17 = vsel %vm506_vm13, %v1353_v15, %v1355_v14  ;;  %v1360_v3 = vsel %vm506_vm13, %v1355_v14, %v1353_v15 }
  0x9a   :  { %v1362_v0 = vsel %vm1990_vm10, %v1360_v3, 0.0  ;;  %v1361_v19 = vsel %vm1976_vm8, %v1356_v17, 0.0 }
  0x9b   :  { %1792 = vmatprep.subr.msk.mxu1 %vm70_vm1, %v1362_v0 }
  0x9c   :  { %1754 = vmatmul.mubr.msk.f32.vlgmr.msra.gmra.mrb[0].mxu0 %vm66_vm3, %v1751_v1  ;;  %v601_v21 = vpop.permute.xlu1 %600  ;;  %v599_v22 = vpop.permute.xlu0 %598 }
  0x9d   :  { %1790 = vmatmul.mubr.msk.f32.vlgmr.msra.gmra.mrb[0].mxu1 %vm66_vm3, %v1751_v1  ;;  %1757 = vmatpush1.msk.msra.mxu0 %vm70_vm1, %v512_v18  ;;  %v607_v23 = vsel %vm602_vm15, %v601_v21, %v599_v22  ;;  %v603_v24 = vsel %vm602_vm15, %v599_v22, %v601_v21 }
  0x9e   :  { %v609_v25 = vsel %vm2082_vm0, %v607_v23, 0.0  ;;  %589 = vmatprep.mubr.f32.mxu0 %v1852_v2  ;;  %1793 = vmatpush1.msk.msra.mxu1 %vm70_vm1, %v1361_v19  ;;  %v608_v31 = vsel %vm1940_vm4, %v603_v24, 0.0 }
  0x9f   :  { %1437 = vmatprep.mubr.f32.mxu1 %v1852_v2  ;;  %1760 = vmatprep.subr.msk.mxu0 %vm70_vm1, %v609_v25 }
  0xa0   :  { %v1449_v26 = vpop.permute.xlu1 %1448  ;;  %v1447_v27 = vpop.permute.xlu0 %1446 }
  0xa1   :  { %v1450_v29 = vsel %vm602_vm15, %v1447_v27, %v1449_v26  ;;  %v1454_v30 = vsel %vm602_vm15, %v1449_v26, %v1447_v27 }
  0xa2   :  { %v1456_v32 = vsel %vm2082_vm0, %v1454_v30, 0.0  ;;  %v1455_v33 = vsel %vm1940_vm4, %v1450_v29, 0.0  ;;  %vm794_vm4 = vcmask 908288  }
  0xa3   :  { %1796 = vmatprep.subr.msk.mxu1 %vm70_vm1, %v1456_v32 }
  0xa4   :  { %1758 = vmatmul.mubr.msk.f32.vlgmr.msra.gmra.mrb[0].mxu0 %vm66_vm3, %v1755_v28  ;;  %v697_v35 = vpop.permute.xlu1 %696  ;;  %v695_v36 = vpop.permute.xlu0 %694 }
  0xa5   :  { %1794 = vmatmul.mubr.msk.f32.vlgmr.msra.gmra.mrb[0].mxu1 %vm66_vm3, %v1755_v28  ;;  %1761 = vmatpush1.msk.msra.mxu0 %vm70_vm1, %v608_v31  ;;  %v703_v37 = vsel %vm698_vm2, %v697_v35, %v695_v36  ;;  %v699_v43 = vsel %vm698_vm2, %v695_v36, %v697_v35 }
  0xa6   :  { %v705_v38 = vsel %vm30_vm14, %v703_v37, 0.0  ;;  %685 = vmatprep.mubr.f32.mxu0 %v1852_v2  ;;  %1797 = vmatpush1.msk.msra.mxu1 %vm70_vm1, %v1455_v33 }
  0xa7   :  { %1531 = vmatprep.mubr.f32.mxu1 %v1852_v2  ;;  %1764 = vmatprep.subr.msk.mxu0 %vm70_vm1, %v705_v38 }
  0xa8   :  { %v1543_v16 = vpop.permute.xlu1 %1542  ;;  %v1541_v39 = vpop.permute.xlu0 %1540 }
  0xa9   :  { %v1548_v42 = vsel %vm698_vm2, %v1543_v16, %v1541_v39  ;;  %v1544_v45 = vsel %vm698_vm2, %v1541_v39, %v1543_v16 }
  0xaa   :  { %v1550_v44 = vsel %vm30_vm14, %v1548_v42, 0.0 }
  0xab   :  { %1800 = vmatprep.subr.msk.mxu1 %vm70_vm1, %v1550_v44 }
  0xac   :  { %1762 = vmatmul.mubr.msk.f32.vlgmr.msra.gmra.mrb[0].mxu0 %vm66_vm3, %v1759_v41  ;;  %v793_v47 = vpop.permute.xlu1 %792  ;;  %v791_v48 = vpop.permute.xlu0 %790 }
  0xad   :  { %1798 = vmatmul.mubr.msk.f32.vlgmr.msra.gmra.mrb[0].mxu1 %vm66_vm3, %v1759_v41  ;;  %1765 = vmatpush1.msk.msra.mxu0 %vm70_vm1, %v699_v43  ;;  %v799_v49 = vsel %vm794_vm4, %v793_v47, %v791_v48  ;;  %v795_v40 = vsel %vm794_vm4, %v791_v48, %v793_v47 }
  0xae   :  { %1801 = vmatpush1.msk.msra.mxu1 %vm70_vm1, %v1544_v45  ;;  %781 = vmatprep.mubr.f32.mxu0 %v1852_v2  ;;  %v801_v9 = vsel %vm2132_vm5, %v799_v49, 0.0  ;;  %v800_v55 = vsel %vm1976_vm8, %v795_v40, 0.0 }
  0xaf   :  { %1625 = vmatprep.mubr.f32.mxu1 %v1852_v2  ;;  %1768 = vmatprep.subr.msk.mxu0 %vm70_vm1, %v801_v9 }
  0xb0   :  { %v1637_v50 = vpop.permute.xlu1 %1636  ;;  %v1635_v51 = vpop.permute.xlu0 %1634 }
  0xb1   :  { %v1638_v53 = vsel %vm794_vm4, %v1635_v51, %v1637_v50  ;;  %v1642_v54 = vsel %vm794_vm4, %v1637_v50, %v1635_v51 }
  0xb2   :  { %v1644_v56 = vsel %vm2132_vm5, %v1642_v54, 0.0  ;;  %v1643_v57 = vsel %vm1976_vm8, %v1638_v53, 0.0 }
  0xb3   :  { %1804 = vmatprep.subr.msk.mxu1 %vm70_vm1, %v1644_v56 }
  0xb4   :  { %1766 = vmatmul.mubr.msk.f32.vlgmr.msra.gmra.mrb[0].mxu0 %vm66_vm3, %v1763_v52 }
  0xb5   :  { %1802 = vmatmul.mubr.msk.f32.vlgmr.msra.gmra.mrb[0].mxu1 %vm66_vm3, %v1763_v52  ;;  %1769 = vmatpush1.msk.msra.mxu0 %vm70_vm1, %v800_v55 }
  0xb6   :  { %877 = vmatprep.mubr.f32.mxu0 %v1852_v2  ;;  %1805 = vmatpush1.msk.msra.mxu1 %vm70_vm1, %v1643_v57 }
  0xb7   :  { %1719 = vmatprep.mubr.f32.mxu1 %v1852_v2 }
  0xbc   :  { %1770 = vmatmul.mubr.msk.f32.vlgmr.msra.gmra.mrb[0].mxu0 %vm66_vm3, %v1767_v58 }
  0xbd   :  { %1806 = vmatmul.mubr.msk.f32.vlgmr.msra.gmra.mrb[0].mxu1 %vm66_vm3, %v1767_v58 }
  0xc1   :  { %v889_v34 = vpop.permute.xlu0 %888 }
 0x18f   :  { %v879_v59 = vpop.f32.mrb[0].mxu0 }
 0x190   :  { %v891_v60 = vadd.f32 %v889_v34, %v879_v59  ;;  %v881_v61 = vpop.f32.mrb[1].mxu0  ;;  %v1721_v62 = vpop.f32.mrb[0].mxu1 }
 0x191   :  { %v892_v63 = vadd.f32 %v889_v34, %v881_v61  ;;  %v1728_v5 = vadd.f32 %v1721_v62, %v889_v34  ;;  %v1723_v6 = vpop.f32.mrb[1].mxu1 }
 0x192   :  { %893 = vst [vmem:[%s2185_s3] sm:$0xff] %v891_v60  ;;  %v1729_v2 = vadd.f32 %v1723_v6, %v889_v34 }
 0x193   :  { %894 = vst [vmem:[%s2185_s3 + $0x8] sm:$0xff] %v892_v63  ;;  %1730 = vst [vmem:[%s2185_s3 + $0x10] sm:$0xff] %v1728_v5 }
 0x194   :  { %1731 = vst [vmem:[%s2185_s3 + $0x18] sm:$0xff] %v1729_v2 }

</bundles_post_ra>
